<compile_context>
chip_gen: v5e
topology: v5e:2x2
jax: 0.10.0
libtpu: 0.0.40
codegen_flags: <defaults>
</compile_context>

<pallas_src>
import functools

import jax
import jax.numpy as jnp
import numpy as np
from jax import lax
from jax.experimental import pallas as pl
from jax.experimental.pallas import tpu as pltpu

EPS = 1e-5                       # PyTorch BatchNorm2d default eps
_VMEM_LIMIT = 48 * 1024 * 1024   # > default scoped limit, < physical on v5e/v6e/v7x


# --------------------------- host-side (numpy) weight matrices ---------------------------
def _avg_pool_matrix(size, k):
    """1-D avg_pool2d(k, stride=k, pad=0) as a (out, size) matrix (floor mode)."""
    out = (size - k) // k + 1
    m = np.zeros((out, size), np.float32)
    for r in range(out):
        m[r, r * k:(r + 1) * k] = 1.0 / k
    return m


def _interp_matrix(out_len, in_len):
    """1-D F.interpolate(mode='bilinear', align_corners=True) as (out_len, in_len)."""
    m = np.zeros((out_len, in_len), np.float32)
    for o in range(out_len):
        if in_len == 1 or out_len == 1:
            src = 0.0
        else:
            src = o * (in_len - 1) / (out_len - 1)
        i0 = min(int(np.floor(src)), in_len - 1)
        i1 = min(i0 + 1, in_len - 1)
        f = src - i0
        m[o, i0] += 1.0 - f
        m[o, i1] += f
    return m


def _pick_tile(total, unit, bytes_per_unit, budget):
    """Pick a tile length along one axis: the full extent if it fits the VMEM budget,
    else the largest unit-aligned divisor of `total` that fits, else a unit-aligned cap
    (ragged last block, handled by Pallas padding/masking)."""
    if total * bytes_per_unit <= budget:
        return total
    cap = max(unit, int(budget // max(bytes_per_unit, 1)) // unit * unit)
    for cand in range(min(cap, total), unit - 1, -unit):
        if total % cand == 0:
            return cand
    return min(cap, total)


# --------------------------------- Pallas kernels ---------------------------------
def _pool_all_kernel(n_levels, x_ref, *refs):
    """Fused multi-level average pooling in channel-major layout.

    x_ref: (1, Ct, HW) block; P2T_l: (HW, pp_l); out_l: (1, Ct, pp_l) f32.
    """
    p_refs = refs[:n_levels]
    o_refs = refs[n_levels:]
    xb = x_ref[0]                                                   # (Ct, HW)
    for p, o in zip(p_refs, o_refs):
        o[0] = jnp.dot(xb, p[...], preferred_element_type=jnp.float32)


def _cbr_all_kernel(n_levels, batch, *refs):
    """All levels' 1x1 conv (no bias) + BatchNorm2d (training batch stats) + ReLU.

    refs = pooled_0..L-1 (N,C,pp_l), w_0..L-1 (Co,C), g_0..L-1 (Co,1), b_0..L-1 (Co,1),
           out_0..L-1 (N,Co,pp_l).
    """
    pooled = refs[0 * n_levels:1 * n_levels]
    w = refs[1 * n_levels:2 * n_levels]
    g = refs[2 * n_levels:3 * n_levels]
    b = refs[3 * n_levels:4 * n_levels]
    outs = refs[4 * n_levels:5 * n_levels]
    for l in range(n_levels):
        wl = w[l][...]                                              # (Co, C)
        ys = [jnp.dot(wl, pooled[l][n], preferred_element_type=jnp.float32)
              for n in range(batch)]                                # each (Co, pp)
        y_all = jnp.concatenate(ys, axis=1)                         # (Co, N*pp)
        mean = jnp.mean(y_all, axis=1, keepdims=True)
        var = jnp.mean(jnp.square(y_all - mean), axis=1, keepdims=True)  # biased batch var
        scale = g[l][...] * lax.rsqrt(var + EPS)                    # EUP rsqrt
        shift = b[l][...] - mean * scale
        for n in range(batch):
            outs[l][n] = jnp.maximum(ys[n] * scale + shift, 0.0)    # 1 FMA + 1 max / elem


def _upsample_concat_kernel(pooled_hw, x_ref, *refs):
    """Bilinear (align_corners=True) upsample of every level + channel concat with x,
    written as one lane-dense (C_total, tile_hw) store.

    refs = a_0..L-1 (1,Co,pp_l), then U2T blocks (pp_l, tile_hw) for levels with pp>1,
           then the output block (1, C_total, tile_hw).
    """
    n_levels = len(pooled_hw)
    a_refs = refs[:n_levels]
    u_refs = refs[n_levels:-1]
    out_ref = refs[-1]
    tile_hw = out_ref.shape[2]
    odt = out_ref.dtype

    parts = [x_ref[0].astype(odt)]                                  # (C, tile_hw)
    ui = 0
    for l, pp in enumerate(pooled_hw):
        a = a_refs[l][0]                                            # (Co, pp) f32
        if pp == 1:
            # pool_size==1 level: skip the depth-1 matmul, broadcast on the VPU.
            up = jnp.broadcast_to(a, (a.shape[0], tile_hw))
        else:
            u = u_refs[ui][...]                                     # (pp, tile_hw)
            ui += 1
            up = jnp.dot(a.astype(u.dtype), u, preferred_element_type=jnp.float32)
        parts.append(up.astype(odt))
    out_ref[0] = jnp.concatenate(parts, axis=0)                     # (C_total, tile_hw)


# --------------------------------- module wrapper ---------------------------------
def pyramid_pooling(x, weights, gammas, betas, pool_sizes, compute_dtype=jnp.float32):
    """x: (N, C, H, W).  weights[l]: (Co, C) 1x1 conv kernels.  gammas/betas[l]: (Co,).

    Returns (N, C + L*Co, H, W) in `compute_dtype` (f32 by default = exact module
    semantics; bf16 halves the streaming HBM traffic).
    """
    N, C, H, W = x.shape
    L = len(pool_sizes)
    HW = H * W
    Co = weights[0].shape[0]
    C_total = C + L * Co
    itemsize = np.dtype(compute_dtype).itemsize

    # NCHW kept end-to-end: (N, C, H, W) -> (N, C, HW) is a free view, no transpose.
    x_flat = x.reshape(N, C, HW).astype(compute_dtype)

    # host-side pooling / interpolation matrices (kron of 1-D weights, channel-major)
    p2t_mats, u2t_mats, pooled_hw = [], [], []
    for ps in pool_sizes:
        kh, kw = H // ps, W // ps
        ph = _avg_pool_matrix(H, kh)
        pw = _avg_pool_matrix(W, kw)
        oh, ow = ph.shape[0], pw.shape[0]
        p2t_mats.append(jnp.asarray(np.kron(ph, pw).T, dtype=compute_dtype))   # (HW, pp)
        u2t_mats.append(jnp.asarray(np.kron(_interp_matrix(H, oh),
                                            _interp_matrix(W, ow)).T,
                                    dtype=compute_dtype))                      # (pp, HW)
        pooled_hw.append(oh * ow)
    sum_pp = sum(pooled_hw)

    # ---- K1: fused multi-level average pooling (x read from HBM exactly once) ----
    c_tile = _pick_tile(C, 8, (HW * itemsize + sum_pp * 4) * 2, _VMEM_LIMIT // 2)
    pooled = pl.pallas_call(
        functools.partial(_pool_all_kernel, L),
        grid=(N, pl.cdiv(C, c_tile)),
        in_specs=[pl.BlockSpec((1, c_tile, HW), lambda n, c: (n, c, 0))]
                 + [pl.BlockSpec((HW, pp), lambda n, c: (0, 0)) for pp in pooled_hw],
        out_specs=[pl.BlockSpec((1, c_tile, pp), lambda n, c: (n, c, 0))
                   for pp in pooled_hw],
        out_shape=[jax.ShapeDtypeStruct((N, C, pp), jnp.float32) for pp in pooled_hw],
        compiler_params=pltpu.CompilerParams(
            dimension_semantics=("parallel", "parallel"),
            vmem_limit_bytes=_VMEM_LIMIT),
    )(x_flat, *p2t_mats)

    # ---- K2: ONE call for all levels' 1x1 conv + BN + ReLU (tiny tensors in VMEM) ----
    a_list = pl.pallas_call(
        functools.partial(_cbr_all_kernel, L, N),
        out_shape=[jax.ShapeDtypeStruct((N, Co, pp), jnp.float32) for pp in pooled_hw],
        in_specs=[pl.BlockSpec(memory_space=pltpu.MemorySpace.VMEM)] * (4 * L),
        out_specs=[pl.BlockSpec(memory_space=pltpu.MemorySpace.VMEM)] * L,
    )(*pooled,
      *[jnp.asarray(w, jnp.float32) for w in weights],
      *[jnp.asarray(g, jnp.float32).reshape(Co, 1) for g in gammas],
      *[jnp.asarray(b, jnp.float32).reshape(Co, 1) for b in betas])

    # ---- K3: fused upsample of every level + channel concat with x, writing the
    #          final (N, C_total, HW) NCHW buffer directly (no XLA concat/transpose) ----
    sum_pp_gt1 = sum(pp for pp in pooled_hw if pp > 1)
    hw_tile = _pick_tile(HW, 128, (C + C_total + sum_pp_gt1) * itemsize * 2,
                         _VMEM_LIMIT // 2)

    in_specs = [pl.BlockSpec((1, C, hw_tile), lambda n, s: (n, 0, s))]
    in_specs += [pl.BlockSpec((1, Co, pp), lambda n, s: (n, 0, 0)) for pp in pooled_hw]
    u_args = []
    for l, pp in enumerate(pooled_hw):
        if pp > 1:
            in_specs.append(pl.BlockSpec((pp, hw_tile), lambda n, s: (0, s)))
            u_args.append(u2t_mats[l])

    out_flat = pl.pallas_call(
        functools.partial(_upsample_concat_kernel, tuple(pooled_hw)),
        grid=(N, pl.cdiv(HW, hw_tile)),
        in_specs=in_specs,
        out_specs=pl.BlockSpec((1, C_total, hw_tile), lambda n, s: (n, 0, s)),
        out_shape=jax.ShapeDtypeStruct((N, C_total, HW), compute_dtype),
        compiler_params=pltpu.CompilerParams(
            dimension_semantics=("parallel", "parallel"),
            vmem_limit_bytes=_VMEM_LIMIT),
    )(x_flat, *a_list, *u_args)

    return out_flat.reshape(N, C_total, H, W)       # free view back to (N, C_total, H, W)


# ---------------- pure-JAX reference (independent gather/lerp formulation) ----------------
def _ref_pyramid_pooling(x, weights, gammas, betas, pool_sizes):
    N, C, H, W = x.shape
    outs = [x]

    def lerp_idx(out_len, in_len):
        o = np.arange(out_len, dtype=np.float64)
        if in_len == 1 or out_len == 1:
            src = np.zeros(out_len)
        else:
            src = o * (in_len - 1) / (out_len - 1)
        i0 = np.minimum(np.floor(src).astype(np.int32), in_len - 1)
        i1 = np.minimum(i0 + 1, in_len - 1)
        f = (src - i0).astype(np.float32)
        return i0, i1, f

    for l, ps in enumerate(pool_sizes):
        kh, kw = H // ps, W // ps
        pooled = lax.reduce_window(x, 0.0, lax.add,
                                   (1, 1, kh, kw), (1, 1, kh, kw), 'VALID') / (kh * kw)
        y = jnp.einsum('nchw,oc->nohw', pooled, weights[l])              # 1x1 conv, no bias
        mean = y.mean(axis=(0, 2, 3), keepdims=True)
        var = jnp.square(y - mean).mean(axis=(0, 2, 3), keepdims=True)
        y = (y - mean) / jnp.sqrt(var + EPS)
        y = y * gammas[l][None, :, None, None] + betas[l][None, :, None, None]
        a = jnp.maximum(y, 0.0)                                          # (N, Co, oh, ow)
        oh, ow = a.shape[2], a.shape[3]
        h0, h1, fh = lerp_idx(H, oh)
        w0, w1, fw = lerp_idx(W, ow)
        rows = (a[:, :, h0, :] * (1.0 - fh)[None, None, :, None]
                + a[:, :, h1, :] * fh[None, None, :, None])              # (N, Co, H, ow)
        up = (rows[:, :, :, w0] * (1.0 - fw)[None, None, None, :]
              + rows[:, :, :, w1] * fw[None, None, None, :])             # (N, Co, H, W)
        outs.append(up)
    return jnp.concatenate(outs, axis=1)


if __name__ == "__main__":
    # pyramidPooling(in_channels=8, pool_sizes=[1, 2, 3, 6]) in training mode, fusion='cat'.
    N, C, H, W = 2, 8, 12, 12
    pool_sizes = (1, 2, 3, 6)
    Co = C // len(pool_sizes)        # int(in_channels / len(pool_sizes)) = 2

    key = jax.random.PRNGKey(0)
    kx, *kws = jax.random.split(key, 1 + 3 * len(pool_sizes))
    x = jax.random.normal(kx, (N, C, H, W), jnp.float32)
    weights, gammas, betas = [], [], []
    for l in range(len(pool_sizes)):
        weights.append(0.2 * jax.random.normal(kws[3 * l], (Co, C), jnp.float32))
        gammas.append(1.0 + 0.1 * jax.random.normal(kws[3 * l + 1], (Co,), jnp.float32))
        betas.append(0.1 * jax.random.normal(kws[3 * l + 2], (Co,), jnp.float32))

    ref = _ref_pyramid_pooling(x, weights, gammas, betas, pool_sizes)

    # f32 path: exact module semantics.
    out = jax.block_until_ready(pyramid_pooling(x, weights, gammas, betas, pool_sizes))
    assert out.shape == (N, C + len(pool_sizes) * Co, H, W)
    np.testing.assert_allclose(np.asarray(out), np.asarray(ref), rtol=1e-3, atol=1e-3)

    # bf16 streaming path (halved HBM bytes for the x read / output write).  Compared
    # against a reference fed the same bf16-cast input so the BN batch-statistic
    # normalization at these tiny toy shapes does not amplify the input-cast error.
    out_bf = jax.block_until_ready(
        pyramid_pooling(x, weights, gammas, betas, pool_sizes,
                        compute_dtype=jnp.bfloat16))
    ref_bf = _ref_pyramid_pooling(x.astype(jnp.bfloat16).astype(jnp.float32),
                                  weights, gammas, betas, pool_sizes)
    np.testing.assert_allclose(np.asarray(out_bf.astype(jnp.float32)),
                               np.asarray(ref_bf), rtol=5e-2, atol=5e-2)

    print("KERNEL_OK")
</pallas_src>

<mosaic_0001>
module attributes {stable_mosaic.version = 11 : i64} {
  func.func @_pool_all_kernel(%arg0: i32, %arg1: i32, %arg2: memref<1x8x144xf32, #tpu.memory_space<vmem>>, %arg3: memref<144x1xf32, #tpu.memory_space<vmem>>, %arg4: memref<144x4xf32, #tpu.memory_space<vmem>>, %arg5: memref<144x9xf32, #tpu.memory_space<vmem>>, %arg6: memref<144x36xf32, #tpu.memory_space<vmem>>, %arg7: memref<1x8x1xf32, #tpu.memory_space<vmem>>, %arg8: memref<1x8x4xf32, #tpu.memory_space<vmem>>, %arg9: memref<1x8x9xf32, #tpu.memory_space<vmem>>, %arg10: memref<1x8x36xf32, #tpu.memory_space<vmem>>) attributes {dimension_semantics = [#tpu.dimension_semantics<parallel>, #tpu.dimension_semantics<parallel>], iteration_bounds = array<i64: 2, 1>, scalar_prefetch = 0 : i64, scratch_operands = 0 : i64, tpu.core_type = #tpu.core_type<tc>, window_params = [{transform_indices = @transform_0, window_bounds = array<i64: 1, 8, 144>}, {pipeline_mode = #tpu.pipeline_mode<synchronous>, transform_indices = @transform_1, window_bounds = array<i64: 144, 1>}, {pipeline_mode = #tpu.pipeline_mode<synchronous>, transform_indices = @transform_2, window_bounds = array<i64: 144, 4>}, {pipeline_mode = #tpu.pipeline_mode<synchronous>, transform_indices = @transform_3, window_bounds = array<i64: 144, 9>}, {pipeline_mode = #tpu.pipeline_mode<synchronous>, transform_indices = @transform_4, window_bounds = array<i64: 144, 36>}, {transform_indices = @transform_5, window_bounds = array<i64: 1, 8, 1>}, {transform_indices = @transform_6, window_bounds = array<i64: 1, 8, 4>}, {transform_indices = @transform_7, window_bounds = array<i64: 1, 8, 9>}, {transform_indices = @transform_8, window_bounds = array<i64: 1, 8, 36>}]} {
    %c0 = arith.constant 0 : index
    %c0_0 = arith.constant 0 : index
    %c0_1 = arith.constant 0 : index
    %0 = vector.load %arg2[%c0, %c0_0, %c0_1] : memref<1x8x144xf32, #tpu.memory_space<vmem>>, vector<1x8x144xf32>
    %1 = vector.shape_cast %0 : vector<1x8x144xf32> to vector<8x144xf32>
    %c0_2 = arith.constant 0 : index
    %c0_3 = arith.constant 0 : index
    %2 = vector.load %arg3[%c0_2, %c0_3] : memref<144x1xf32, #tpu.memory_space<vmem>>, vector<144x1xf32>
    %cst = arith.constant dense<0.000000e+00> : vector<8x1xf32>
    %3 = tpu.matmul %1, %2, %cst {dimension_numbers = #tpu.dot_dimension_numbers<[1], [0], [0], [1], [0, 0, 1, 1], [], []>} : vector<8x144xf32>, vector<144x1xf32>, vector<8x1xf32> -> vector<8x1xf32>
    %c0_4 = arith.constant 0 : index
    %c0_5 = arith.constant 0 : index
    %c0_6 = arith.constant 0 : index
    %4 = vector.load %arg7[%c0_4, %c0_5, %c0_6] : memref<1x8x1xf32, #tpu.memory_space<vmem>>, vector<1x8x1xf32>
    %5 = vector.shape_cast %4 : vector<1x8x1xf32> to vector<8x1xf32>
    %6 = vector.shape_cast %3 : vector<8x1xf32> to vector<1x8x1xf32>
    tpu.vector_store %arg7[%c0_4, %c0_5, %c0_6], %6 {strides = array<i32>} : memref<1x8x1xf32, #tpu.memory_space<vmem>>, vector<1x8x1xf32>,
    %c0_7 = arith.constant 0 : index
    %c0_8 = arith.constant 0 : index
    %7 = vector.load %arg4[%c0_7, %c0_8] : memref<144x4xf32, #tpu.memory_space<vmem>>, vector<144x4xf32>
    %cst_9 = arith.constant dense<0.000000e+00> : vector<8x4xf32>
    %8 = tpu.matmul %1, %7, %cst_9 {dimension_numbers = #tpu.dot_dimension_numbers<[1], [0], [0], [1], [0, 0, 1, 1], [], []>} : vector<8x144xf32>, vector<144x4xf32>, vector<8x4xf32> -> vector<8x4xf32>
    %c0_10 = arith.constant 0 : index
    %c0_11 = arith.constant 0 : index
    %c0_12 = arith.constant 0 : index
    %9 = vector.load %arg8[%c0_10, %c0_11, %c0_12] : memref<1x8x4xf32, #tpu.memory_space<vmem>>, vector<1x8x4xf32>
    %10 = vector.shape_cast %9 : vector<1x8x4xf32> to vector<8x4xf32>
    %11 = vector.shape_cast %8 : vector<8x4xf32> to vector<1x8x4xf32>
    tpu.vector_store %arg8[%c0_10, %c0_11, %c0_12], %11 {strides = array<i32>} : memref<1x8x4xf32, #tpu.memory_space<vmem>>, vector<1x8x4xf32>,
    %c0_13 = arith.constant 0 : index
    %c0_14 = arith.constant 0 : index
    %12 = vector.load %arg5[%c0_13, %c0_14] : memref<144x9xf32, #tpu.memory_space<vmem>>, vector<144x9xf32>
    %cst_15 = arith.constant dense<0.000000e+00> : vector<8x9xf32>
    %13 = tpu.matmul %1, %12, %cst_15 {dimension_numbers = #tpu.dot_dimension_numbers<[1], [0], [0], [1], [0, 0, 1, 1], [], []>} : vector<8x144xf32>, vector<144x9xf32>, vector<8x9xf32> -> vector<8x9xf32>
    %c0_16 = arith.constant 0 : index
    %c0_17 = arith.constant 0 : index
    %c0_18 = arith.constant 0 : index
    %14 = vector.load %arg9[%c0_16, %c0_17, %c0_18] : memref<1x8x9xf32, #tpu.memory_space<vmem>>, vector<1x8x9xf32>
    %15 = vector.shape_cast %14 : vector<1x8x9xf32> to vector<8x9xf32>
    %16 = vector.shape_cast %13 : vector<8x9xf32> to vector<1x8x9xf32>
    tpu.vector_store %arg9[%c0_16, %c0_17, %c0_18], %16 {strides = array<i32>} : memref<1x8x9xf32, #tpu.memory_space<vmem>>, vector<1x8x9xf32>,
    %c0_19 = arith.constant 0 : index
    %c0_20 = arith.constant 0 : index
    %17 = vector.load %arg6[%c0_19, %c0_20] : memref<144x36xf32, #tpu.memory_space<vmem>>, vector<144x36xf32>
    %cst_21 = arith.constant dense<0.000000e+00> : vector<8x36xf32>
    %18 = tpu.matmul %1, %17, %cst_21 {dimension_numbers = #tpu.dot_dimension_numbers<[1], [0], [0], [1], [0, 0, 1, 1], [], []>} : vector<8x144xf32>, vector<144x36xf32>, vector<8x36xf32> -> vector<8x36xf32>
    %c0_22 = arith.constant 0 : index
    %c0_23 = arith.constant 0 : index
    %c0_24 = arith.constant 0 : index
    %19 = vector.load %arg10[%c0_22, %c0_23, %c0_24] : memref<1x8x36xf32, #tpu.memory_space<vmem>>, vector<1x8x36xf32>
    %20 = vector.shape_cast %19 : vector<1x8x36xf32> to vector<8x36xf32>
    %21 = vector.shape_cast %18 : vector<8x36xf32> to vector<1x8x36xf32>
    tpu.vector_store %arg10[%c0_22, %c0_23, %c0_24], %21 {strides = array<i32>} : memref<1x8x36xf32, #tpu.memory_space<vmem>>, vector<1x8x36xf32>,
    return
  }
  func.func @transform_0(%arg0: i32, %arg1: i32) -> (i32, i32, i32) {
    %c0_i32 = arith.constant 0 : i32
    %c0_i32_0 = arith.constant 0 : i32
    return %arg0, %arg1, %c0_i32 : i32, i32, i32
  }
  func.func @transform_1(%arg0: i32, %arg1: i32) -> (i32, i32) {
    %c0_i32 = arith.constant 0 : i32
    %c0_i32_0 = arith.constant 0 : i32
    %c0_i32_1 = arith.constant 0 : i32
    return %c0_i32, %c0_i32_0 : i32, i32
  }
  func.func @transform_2(%arg0: i32, %arg1: i32) -> (i32, i32) {
    %c0_i32 = arith.constant 0 : i32
    %c0_i32_0 = arith.constant 0 : i32
    %c0_i32_1 = arith.constant 0 : i32
    return %c0_i32, %c0_i32_0 : i32, i32
  }
  func.func @transform_3(%arg0: i32, %arg1: i32) -> (i32, i32) {
    %c0_i32 = arith.constant 0 : i32
    %c0_i32_0 = arith.constant 0 : i32
    %c0_i32_1 = arith.constant 0 : i32
    return %c0_i32, %c0_i32_0 : i32, i32
  }
  func.func @transform_4(%arg0: i32, %arg1: i32) -> (i32, i32) {
    %c0_i32 = arith.constant 0 : i32
    %c0_i32_0 = arith.constant 0 : i32
    %c0_i32_1 = arith.constant 0 : i32
    return %c0_i32, %c0_i32_0 : i32, i32
  }
  func.func @transform_5(%arg0: i32, %arg1: i32) -> (i32, i32, i32) {
    %c0_i32 = arith.constant 0 : i32
    %c0_i32_0 = arith.constant 0 : i32
    return %arg0, %arg1, %c0_i32 : i32, i32, i32
  }
  func.func @transform_6(%arg0: i32, %arg1: i32) -> (i32, i32, i32) {
    %c0_i32 = arith.constant 0 : i32
    %c0_i32_0 = arith.constant 0 : i32
    return %arg0, %arg1, %c0_i32 : i32, i32, i32
  }
  func.func @transform_7(%arg0: i32, %arg1: i32) -> (i32, i32, i32) {
    %c0_i32 = arith.constant 0 : i32
    %c0_i32_0 = arith.constant 0 : i32
    return %arg0, %arg1, %c0_i32 : i32, i32, i32
  }
  func.func @transform_8(%arg0: i32, %arg1: i32) -> (i32, i32, i32) {
    %c0_i32 = arith.constant 0 : i32
    %c0_i32_0 = arith.constant 0 : i32
    return %arg0, %arg1, %c0_i32 : i32, i32, i32
  }
}

</mosaic_0001>

<bundles_post_ra>
// kernel: tpu_custom_call.1
= control target key start
LH: loop header
LB: loop body
LE: loop exit
PB: predicated region body
PF: predicated region fallthrough
CT: control target
= control target key end

     0   :  { %s1451_s0 = inlined_call_operand.vmem [shape: f32[2,8,144], index: 0, kind: input, shape index: {}]   ;;  %s1452_s1 = inlined_call_operand.vmem [shape: f32[144,1], index: 1, kind: input, shape index: {}]   ;;  %s1453_s2 = inlined_call_operand.vmem [shape: f32[144,4], index: 2, kind: input, shape index: {}]   ;;  %s1454_s3 = inlined_call_operand.vmem [shape: f32[144,9], index: 3, kind: input, shape index: {}]   ;;  %s1455_s4 = inlined_call_operand.vmem [shape: f32[144,36], index: 4, kind: input, shape index: {}]   ;;  %s1456_s5 = inlined_call_operand.vmem [shape: f32[2,8,1], index: 5, kind: output, shape index: {0}]   ;;  %s1457_s6 = inlined_call_operand.vmem [shape: f32[2,8,4], index: 6, kind: output, shape index: {1}]   ;;  %s1458_s7 = inlined_call_operand.hbm [shape: f32[2,8,9], index: 7, kind: output, shape index: {2}]   ;;  %s1459_s8 = inlined_call_operand.hbm [shape: f32[2,8,36], index: 8, kind: output, shape index: {3}]  }
   0x1   :  { %1463 = sst [smem:[#allocation9_spill]] %s1451_s0 }
   0x2   :  { %1464 = sst [smem:[#allocation10_spill]] %s1452_s1 }
   0x3   :  { %1465 = sst [smem:[#allocation11_spill]] %s1453_s2 }
   0x4   :  { %1466 = sst [smem:[#allocation12_spill]] %s1454_s3 }
   0x5   :  { %14 = vsyncpa [#allocation3], 0 }
   0x6   :  { %16 = vsyncpa [#allocation3 + $0x1], 0 }
   0x7   :  { %17 = vsyncpa [#allocation5], 0 }
   0x8   :  { %19 = vsyncpa [#allocation5 + $0x1], 0  ;;  %s1096_s27 = smov 0   ;;  %s1098_s28 = smov 0  }
   0x9   :  { %s1100_s29 = smov 0   ;;  %s1102_s30 = smov 0  }
   0xa   :  { %s1104_s9 = smov 0   ;;  %s1106_s10 = smov 0  }
   0xb LB: > { %s857_s11 = sadd.s32 4294967295, %s1049_s10   ;;  %s858_s12 = sadd.s32 4294967294, %s1049_s10   ;;  %s1049_s10 = sphi %s1106_s10, %s25_s10   ;;  %s1045_s9 = sphi %s1104_s9, %s1481_s9   ;;  %s1041_s30 = sphi %s1102_s30, %s1480_s30   ;;  %s1037_s29 = sphi %s1100_s29, %s1479_s29   ;;  %s1033_s28 = sphi %s1098_s28, %s1478_s28   ;;  %s1029_s27 = sphi %s1096_s27, %s1477_s27  }
   0xc   : > { %s37_s13 = sadd.s32 1, %s1045_s9  ;;  %s214_s14 = sadd.s32 1, %s1037_s29 }
   0xd   : > { %p39_p0 = scmp.ge.s32.totalorder %s37_s13, 2  ;;  %p224_p1 = scmp.ne.s32.totalorder %s1037_s29, %s1033_s28 }
   0xe   : > { %p225_p2 = scmp.eq.s32.totalorder %s857_s11, 1  ;;  %p230_p3 = scmp.ne.s32.totalorder %s1033_s28, %s1029_s27 }
   0xf   : > { %s1483_s13 = smov (%p39_p0, %s37_s13), 0  ;;  %p231_p5 = scmp.eq.s32.totalorder %s858_s12, 1 }
  0x10   : > { %1467 = sst [smem:[#allocation8_spill]] %s1483_s13  ;;  %p1136_p4 = por %p225_p2, %p224_p1 }
  0x11   : > { %s209_s16 = ssub.s32 %s1045_s9, %s1483_s13  ;;  %p861_p6 = scmp.ge.s32.totalorder %s1049_s10, 1 }
  0x12   : > { %p212_p7 = scmp.eq.s32.totalorder %s209_s16, 0  ;;  %p1143_p8 = por %p231_p5, %p230_p3 }
  0x13   : > { %p301_p9 = scmp.lt.s32.totalorder %s1049_s10, 3 }
  0x14   : > { %s1149_s18 = scalar_select %p212_p7, %s1037_s29, %s214_s14  }
  0x15   : > { %p302_p10 = pnand %p861_p6, %p301_p9 }
  0x16   : > { %s1470_s2 = sld [smem:[#allocation11_spill]] (!%p302_p10)  ;;  %p358_p11 = scmp.lt.s32.totalorder (!%p302_p10), %s1041_s30, 1 }
  0x17   : > { %305 = sbr.rel (%p302_p10) target bundleno = 212 (0xd4), region = 40  ;;  %s1471_s1 = sld [smem:[#allocation10_spill]] (!%p302_p10) }
  0x18   : > { %s1472_s3 = sld [smem:[#allocation12_spill]] (!%p302_p10)  ;;  %s1382_s12 = sand.u32 (!%p302_p10), 1, %s1033_s28  }
  0x19   : > { %s1473_s0 = sld [smem:[#allocation9_spill]] (!%p302_p10)  ;;  %s874_s16 = sshll.u32 (!%p302_p10), %s1041_s30, 3 }
  0x1a   : > { %s1462_s19 = sshll.u32 (!%p302_p10), %s1382_s12, 3  ;;  %s664_s22 = scalar_lea.hbm (!%p302_p10), %s1458_s7, %s874_s16 }
  0x1b   : > { %s350_s24 = scalar_lea.vmem (!%p302_p10), [#allocation2], %s1462_s19  ;;  %s679_s21 = scalar_lea.hbm (!%p302_p10), %s1459_s8, %s874_s16 }
  0x1c   : > { %v462_v0 = vld [vmem:[%s1470_s2 + $0x78] sm:$0xff]  ;;  %v461_v2 = vld [vmem:[%s1470_s2 + $0x70] sm:$0xff]  ;;  %v460_v5 = vld [vmem:[%s1470_s2 + $0x68] sm:$0xff]  ;;  %s1260_s14 = scalar_select %p358_p11, %s1041_s30, 1  ;;  %vm401_vm0 = vcmask 130048   ;;  %vm445_vm1 = vcmask 7168  }
  0x1d   : > { %v400_v1 = vld [vmem:[%s1471_s1 + $0x88] sm:$0xff]  ;;  %465 = vmatpush.msra.mxu2 %v462_v0  ;;  %v399_v3 = vld [vmem:[%s1471_s1 + $0x80] sm:$0xff]  ;;  %v398_v6 = vld [vmem:[%s1471_s1 + $0x78] sm:$0xff]  ;;  %s666_s25 = sshll.u32 %s350_s24, 4  ;;  %vm565_vm2 = vcmask 72704   ;;  %s667_s25 = int_to_ptr.vmem [resolvable:$true] %s666_s25 }
  0x1e   : > { %439 = vmatpush.msra.mxu1 %v400_v1  ;;  %v524_v4 = vld [vmem:[%s1472_s3 + $0x88] sm:$0xff]  ;;  %v522_v7 = vld [vmem:[%s1472_s3 + $0x78] sm:$0xff]  ;;  %v523_v8 = vld [vmem:[%s1472_s3 + $0x80] sm:$0xff]  ;;  %405 = vmatpush.msra.mxu0 %v398_v6  ;;  %s878_s23 = sshll.u32 %s1260_s14, 4 }
  0x1f   : > { %559 = vmatpush.msra.mxu3 %v524_v4  ;;  %466 = vmatpush.msra.mxu2 %v461_v2  ;;  %v397_v9 = vld [vmem:[%s1471_s1 + $0x70] sm:$0xff]  ;;  %v459_v11 = vld [vmem:[%s1470_s2 + $0x60] sm:$0xff]  ;;  %v582_v12 = vld [vmem:[%s1455_s4 + $0x78] sm:$0xff]  ;;  %s366_s13 = scalar_lea.vmem %s1473_s0, %s878_s23  ;;  %s668_s23 = sshll.u32 %s664_s22, 4  ;;  %s669_s23 = int_to_ptr.hbm [resolvable:$true] %s668_s23 }
  0x20   : > { %440 = vmatpush.msra.mxu1 %v399_v3  ;;  %v521_v10 = vld [vmem:[%s1472_s3 + $0x70] sm:$0xff]  ;;  %v396_v13 = vld [vmem:[%s1471_s1 + $0x68] sm:$0xff]  ;;  %406 = vmatpush.msra.mxu0 %v397_v9  ;;  %v458_v15 = vld [vmem:[%s1470_s2 + $0x58] sm:$0xff]  ;;  %s642_s22 = scalar_lea.sflag [#allocation3], %s1382_s12  ;;  %s953_s26 = sshra.s32 %s669_s23, 4  ;;  %s954_s26 = int_to_ptr.hbm [resolvable:$true] %s953_s26 }
  0x21   : > { %467 = vmatpush.msra.mxu2 %v460_v5  ;;  %560 = vmatpush.msra.mxu3 %v523_v8  ;;  %v520_v14 = vld [vmem:[%s1472_s3 + $0x68] sm:$0xff]  ;;  %v581_v16 = vld [vmem:[%s1455_s4 + $0x70] sm:$0xff]  ;;  %v395_v17 = vld [vmem:[%s1471_s1 + $0x60] sm:$0xff]  ;;  %s955_s11 = scalar_lea.hbm %s954_s26, 8  ;;  %p960_p1 = scmp.lt.s32.totalorder %s954_s26, %s1458_s7 }
  0x22   : > { %525 = vmatpush.msrb.mxu1 %v522_v7  ;;  %v519_v18 = vld [vmem:[%s1472_s3 + $0x60] sm:$0xff]  ;;  %407 = vmatpush.msra.mxu0 %v396_v13  ;;  %v457_v19 = vld [vmem:[%s1470_s2 + $0x50] sm:$0xff]  ;;  %v580_v20 = vld [vmem:[%s1455_s4 + $0x68] sm:$0xff]  ;;  %p956_p12 = scmp.ne.s32.totalorder %s954_s26, %s955_s11 }
  0x23   : > { %468 = vmatpush.msra.mxu2 %v459_v11  ;;  %585 = vmatpush.msrb.mxu3 %v582_v12  ;;  %v394_v21 = vld [vmem:[%s1471_s1 + $0x58] sm:$0xff]  ;;  %v456_v23 = vld [vmem:[%s1470_s2 + $0x48] sm:$0xff]  ;;  %v579_v24 = vld [vmem:[%s1455_s4 + $0x60] sm:$0xff] }
  0x24   : > { %526 = vmatpush.msrb.mxu1 %v521_v10  ;;  %v518_v22 = vld [vmem:[%s1472_s3 + $0x58] sm:$0xff]  ;;  %408 = vmatpush.msra.mxu0 %v395_v17  ;;  %v393_v25 = vld [vmem:[%s1471_s1 + $0x50] sm:$0xff]  ;;  %v455_v27 = vld [vmem:[%s1470_s2 + $0x40] sm:$0xff]  ;;  %p957_p13 = pnand %p956_p12, %p1136_p4 }
  0x25   : > { %469 = vmatpush.msra.mxu2 %v458_v15  ;;  %586 = vmatpush.msrb.mxu3 %v581_v16  ;;  %v517_v26 = vld [vmem:[%s1472_s3 + $0x50] sm:$0xff]  ;;  %v578_v28 = vld [vmem:[%s1455_s4 + $0x58] sm:$0xff]  ;;  %v392_v29 = vld [vmem:[%s1471_s1 + $0x48] sm:$0xff] }
  0x26   : > { %527 = vmatpush.msrb.mxu1 %v520_v14  ;;  %409 = vmatpush.msra.mxu0 %v394_v21  ;;  %v516_v30 = vld [vmem:[%s1472_s3 + $0x48] sm:$0xff]  ;;  %v454_v31 = vld [vmem:[%s1470_s2 + $0x38] sm:$0xff]  ;;  %v577_v32 = vld [vmem:[%s1455_s4 + $0x50] sm:$0xff]  ;;  %p958_p0 = pneg %p957_p13 }
  0x27   : > { %470 = vmatpush.msra.mxu2 %v457_v19  ;;  %587 = vmatpush.msrb.mxu3 %v580_v20  ;;  %v391_v33 = vld [vmem:[%s1471_s1 + $0x40] sm:$0xff]  ;;  %v453_v35 = vld [vmem:[%s1470_s2 + $0x30] sm:$0xff]  ;;  %v576_v36 = vld [vmem:[%s1455_s4 + $0x48] sm:$0xff] }
  0x28   : > { %528 = vmatpush.msrb.mxu1 %v519_v18  ;;  %410 = vmatpush.msra.mxu0 %v393_v25  ;;  %v515_v34 = vld [vmem:[%s1472_s3 + $0x40] sm:$0xff]  ;;  %v390_v37 = vld [vmem:[%s1471_s1 + $0x38] sm:$0xff]  ;;  %v452_v39 = vld [vmem:[%s1470_s2 + $0x28] sm:$0xff] }
  0x29   : > { %471 = vmatpush.msra.mxu2 %v456_v23  ;;  %588 = vmatpush.msrb.mxu3 %v579_v24  ;;  %v514_v38 = vld [vmem:[%s1472_s3 + $0x38] sm:$0xff]  ;;  %v575_v40 = vld [vmem:[%s1455_s4 + $0x40] sm:$0xff]  ;;  %v389_v41 = vld [vmem:[%s1471_s1 + $0x30] sm:$0xff] }
  0x2a   : > { %529 = vmatpush.msrb.mxu1 %v518_v22  ;;  %411 = vmatpush.msra.mxu0 %v392_v29  ;;  %v513_v42 = vld [vmem:[%s1472_s3 + $0x30] sm:$0xff]  ;;  %v451_v43 = vld [vmem:[%s1470_s2 + $0x20] sm:$0xff]  ;;  %v574_v44 = vld [vmem:[%s1455_s4 + $0x38] sm:$0xff] }
  0x2b   : > { %472 = vmatpush.msra.mxu2 %v455_v27  ;;  %589 = vmatpush.msrb.mxu3 %v578_v28  ;;  %v388_v45 = vld [vmem:[%s1471_s1 + $0x28] sm:$0xff]  ;;  %v450_v47 = vld [vmem:[%s1470_s2 + $0x18] sm:$0xff]  ;;  %v573_v48 = vld [vmem:[%s1455_s4 + $0x30] sm:$0xff] }
  0x2c   : > { %530 = vmatpush.msrb.mxu1 %v517_v26  ;;  %412 = vmatpush.msra.mxu0 %v391_v33  ;;  %v512_v46 = vld [vmem:[%s1472_s3 + $0x28] sm:$0xff]  ;;  %v387_v49 = vld [vmem:[%s1471_s1 + $0x20] sm:$0xff]  ;;  %v449_v51 = vld [vmem:[%s1470_s2 + $0x10] sm:$0xff] }
  0x2d   : > { %473 = vmatpush.msra.mxu2 %v454_v31  ;;  %590 = vmatpush.msrb.mxu3 %v577_v32  ;;  %v511_v50 = vld [vmem:[%s1472_s3 + $0x20] sm:$0xff]  ;;  %v572_v52 = vld [vmem:[%s1455_s4 + $0x28] sm:$0xff]  ;;  %v386_v54 = vld [vmem:[%s1471_s1 + $0x18] sm:$0xff] }
  0x2e   : > { %531 = vmatpush.msrb.mxu1 %v516_v30  ;;  %413 = vmatpush.msra.mxu0 %v390_v37  ;;  %v382_v53 = vld [vmem:[%s366_s13 + $0x8] sm:$0xff]  ;;  %v510_v56 = vld [vmem:[%s1472_s3 + $0x18] sm:$0xff]  ;;  %v571_v57 = vld [vmem:[%s1455_s4 + $0x20] sm:$0xff] }
  0x2f   : > { %474 = vmatpush.msra.mxu2 %v453_v35  ;;  %591 = vmatpush.msrb.mxu3 %v576_v36  ;;  %v448_v55 = vld [vmem:[%s1470_s2 + $0x8] sm:$0xff]  ;;  %v385_v58 = vld [vmem:[%s1471_s1 + $0x10] sm:$0xff]  ;;  %v447_v59 = vld [vmem:[%s1470_s2] sm:$0xff] }
  0x30   : > { %532 = vmatpush.msrb.mxu1 %v515_v34  ;;  %414 = vmatpush.msra.mxu0 %v389_v41  ;;  %v381_v60 = vld [vmem:[%s366_s13] sm:$0xff]  ;;  %v509_v61 = vld [vmem:[%s1472_s3 + $0x10] sm:$0xff]  ;;  %v464_v62 = vld [vmem:[%s1470_s2 + $0x88] sm:$0xff]  ;;  %s1461_s13 = sshll.u32 %s1260_s14, 3 }
  0x31   : > { %475 = vmatpush.msra.mxu2 %v452_v39  ;;  %592 = vmatpush.msrb.mxu3 %v575_v40  ;;  %v570_v63 = vld [vmem:[%s1455_s4 + $0x18] sm:$0xff]  ;;  %v384_v0 = vld [vmem:[%s1471_s1 + $0x8] sm:$0xff]  ;;  %v569_v2 = vld [vmem:[%s1455_s4 + $0x10] sm:$0xff]  ;;  %s373_s0 = scalar_lea.vmem %s1456_s5, %s1461_s13 }
  0x32   : > { %533 = vmatpush.msrb.mxu1 %v514_v38  ;;  %415 = vmatpush.msra.mxu0 %v388_v45  ;;  %v508_v1 = vld [vmem:[%s1472_s3 + $0x8] sm:$0xff]  ;;  %v463_v3 = vld [vmem:[%s1470_s2 + $0x80] sm:$0xff] }
  0x33   : > { %476 = vmatpush.msra.mxu2 %v451_v43  ;;  %593 = vmatpush.msrb.mxu3 %v574_v44  ;;  %v383_v4 = vld [vmem:[%s1471_s1] sm:$0xff]  ;;  %v568_v6 = vld [vmem:[%s1455_s4 + $0x8] sm:$0xff]  ;;  %s959_s1 = scalar_lea.hbm %s1458_s7, 16 }
  0x34   : > { %534 = vmatpush.msrb.mxu1 %v513_v42  ;;  %416 = vmatpush.msra.mxu0 %v387_v49  ;;  %v507_v5 = vld [vmem:[%s1472_s3] sm:$0xff]  ;;  %v584_v7 = vld [vmem:[%s1455_s4 + $0x88] sm:$0xff]  ;;  %p961_p2 = scmp.lt.s32.totalorder %s959_s1, %s955_s11 }
  0x35   : > { %477 = vmatpush.msra.mxu2 %v450_v47  ;;  %594 = vmatpush.msrb.mxu3 %v573_v48  ;;  %v567_v8 = vld [vmem:[%s1455_s4] sm:$0xff] }
  0x36   : > { %535 = vmatpush.msrb.mxu1 %v512_v46  ;;  %417 = vmatpush.msra.mxu0 %v386_v54  ;;  %v583_v9 = vld [vmem:[%s1455_s4 + $0x80] sm:$0xff]  ;;  %p962_p3 = por %p961_p2, %p960_p1 }
  0x37   : > { %478 = vmatpush.msra.mxu2 %v449_v51  ;;  %595 = vmatpush.msrb.mxu3 %v572_v52 }
  0x38   : > { %536 = vmatpush.msrb.mxu1 %v511_v50  ;;  %418 = vmatpush.msra.mxu0 %v385_v58  ;;  %p963_p5 = pnand %p962_p3, %p958_p0 }
  0x39   : > { %868 = vmatmul.msk.f32.vlgmr.msra.gmra.mxu1 %vm401_vm0, %v382_v53  ;;  %479 = vmatpush.msra.mxu2 %v448_v55 }
  0x3a   : > { %537 = vmatpush.msrb.mxu1 %v510_v56  ;;  %596 = vmatpush.msrb.mxu3 %v571_v57 }
  0x3b   : > { %480 = vmatpush.msra.mxu2 %v447_v59  ;;  %870 = vmatmul.msk.f32.vlgmr.msra.gmra.mxu3 %vm401_vm0, %v382_v53 }
  0x3c   : > { %481 = vmatmul.f32.vlgmr.msra.gmra.mxu2 %v381_v60  ;;  %538 = vmatpush.msrb.mxu1 %v509_v61 }
  0x3d   : > { %499 = vmatpush.msrb.mxu2 %v464_v62  ;;  %597 = vmatpush.msrb.mxu3 %v570_v63 }
  0x3e   : > { %419 = vmatpush.msra.mxu0 %v384_v0  ;;  %539 = vmatpush.msrb.mxu1 %v508_v1 }
  0x3f   : > { %598 = vmatpush.msrb.mxu3 %v569_v2  ;;  %500 = vmatpush.msrb.mxu2 %v463_v3 }
  0x40   : > { %420 = vmatpush.msra.mxu0 %v383_v4  ;;  %540 = vmatpush.msrb.mxu1 %v507_v5 }
  0x41   : > { %599 = vmatpush.msrb.mxu3 %v568_v6  ;;  %421 = vmatmul.f32.vlgmr.msra.gmra.mxu0 %v381_v60 }
  0x42   : > { %541 = vmatmul.f32.vlgmr.msrb.gmra.mxu1 %v381_v60  ;;  %619 = vmatpush.msrb.mxu0 %v584_v7 }
  0x43   : > { %600 = vmatpush.msrb.mxu3 %v567_v8 }
  0x44   : > { %601 = vmatmul.f32.vlgmr.msrb.gmra.mxu3 %v381_v60  ;;  %869 = vmatmul.msk.f32.vlgmr.msrb.gmra.mxu2 %vm401_vm0, %v382_v53 }
  0x45   : > { %620 = vmatpush.msrb.mxu0 %v583_v9 }
  0x49   : > { %871 = vmatmul.msk.f32.vlgmr.msrb.gmra.mxu0 %vm401_vm0, %v382_v53 }
  0xb6   : > { %v442_v10 = vpop.f32.mrf.mxu1 }
  0xbe   : > { %v422_v11 = vpop.f32.mrf.mxu0  ;;  %v562_v12 = vpop.f32.mrf.mxu3 }
  0xbf   : > { %v443_v13 = vadd.f32 %v442_v10, %v422_v11  ;;  %v542_v14 = vpop.f32.mrf.mxu1  ;;  %v482_v15 = vpop.f32.mrf.mxu2 }
  0xc0   : > { %v563_v16 = vadd.f32 %v562_v12, %v542_v14 }
  0xc1   : > { %446 = vst.msk [vmem:[%s373_s0] sm:$0xff] %vm445_vm1, %v443_v13 }
  0xc2   : > { %566 = vst.msk [vmem:[%s350_s24] sm:$0xff] %vm565_vm2, %v563_v16 }
  0xc3   : > { %966 = shalt.err (!%p963_p5)
}
  0xc4   : > { %879 = dma.vmem_to_hbm [thread:$0]  (%p1136_p4), %s667_s25, 128, %s669_s23, %s642_s22   ;;  %vm505_vm3 = vcmask 31744   ;;  %vm625_vm4 = vcmask 293888  }
  0xc5   : > { %s1474_s0 = sshll.u32 %s1382_s12, 3  ;;  %s683_s19 = sshll.u32 %s679_s21, 4  ;;  %s684_s19 = int_to_ptr.hbm [resolvable:$true] %s683_s19 }
  0xc6   : > { %v622_v17 = vpop.f32.mrf.mxu0  ;;  %s357_s16 = scalar_lea.vmem [#allocation4], %s1474_s0  ;;  %s1475_s13 = sshll.u32 %s1260_s14, 3 }
  0xc7   : > { %s681_s24 = sshll.u32 %s357_s16, 4  ;;  %v602_v18 = vpop.f32.mrf.mxu3  ;;  %s380_s1 = scalar_lea.vmem %s1457_s6, %s1475_s13  ;;  %v502_v19 = vpop.f32.mrf.mxu2  ;;  %s682_s24 = int_to_ptr.vmem [resolvable:$true] %s681_s24 }
  0xc8   : > { %v623_v20 = vadd.f32 %v622_v17, %v602_v18  ;;  %v503_v21 = vadd.f32 %v502_v19, %v482_v15  ;;  %s647_s3 = scalar_lea.sflag [#allocation5], %s1382_s12  ;;  %s981_s25 = sshra.s32 %s684_s19, 4  ;;  %s982_s25 = int_to_ptr.hbm [resolvable:$true] %s981_s25 }
  0xc9   : > { %s983_s23 = scalar_lea.hbm %s982_s25, 8  ;;  %s987_s21 = scalar_lea.hbm %s1459_s8, 16 }
  0xca   : > { %506 = vst.msk [vmem:[%s380_s1] sm:$0xff] %vm505_vm3, %v503_v21  ;;  %p984_p6 = scmp.ne.s32.totalorder %s982_s25, %s983_s23  ;;  %p988_p10 = scmp.lt.s32.totalorder %s982_s25, %s1459_s8 }
  0xcb   : > { %626 = vst.msk [vmem:[%s357_s16] sm:$0xff] %vm625_vm4, %v623_v20  ;;  %p989_p11 = scmp.lt.s32.totalorder %s987_s21, %s983_s23 }
  0xcc   : > { %p985_p7 = pnand %p984_p6, %p1136_p4 }
  0xcd   : > { %p990_p12 = por %p989_p11, %p988_p10 }
  0xce   : > { %p986_p9 = pneg %p985_p7 }
  0xd0   : > { %p991_p13 = pnand %p990_p12, %p986_p9 }
  0xd2   : > { %994 = shalt.err (!%p991_p13)
}
  0xd3   : > { %880 = dma.vmem_to_hbm [thread:$0]  (%p1136_p4), %s682_s24, 128, %s684_s19, %s647_s3  }
  0xd4 PF: > { %p890_p0 = scmp.ge.s32.totalorder %s1049_s10, 2  ;;  %s715_s12 = sand.u32 1, %s1029_s27  }
  0xd5   : > { %s716_s11 = scalar_lea.sflag [#allocation3], %s715_s12 }
  0xd6   : > { %p884_p1 = pnand %p890_p0, %p1143_p8 }
  0xd8   : > { %p885_p2 = pneg %p884_p1 }
  0xda   : > { %1020 = dma.done.wait (%p885_p2), %s716_s11, 128  }
  0xdb   : > { %1022 = vsyncadd (%p885_p2), %s716_s11, 4294967168  ;;  %s726_s0 = scalar_lea.sflag [#allocation5], %s715_s12 }
  0xdc   : > { %1024 = dma.done.wait (%p885_p2), %s726_s0, 128  }
  0xdd   : > { %1026 = vsyncadd (%p885_p2), %s726_s0, 4294967168  ;;  %s25_s10 = sadd.s32 1, %s1049_s10   ;;  %s1476_s15 = sld [smem:[#allocation8_spill]] }
  0xde   : > { %p22_p3 = scmp.ge.s32.totalorder %s25_s10, 4   ;;  %s1477_s27 = smov %s1033_s28 }
  0xdf   : > { %s1478_s28 = smov %s1037_s29  ;;  %s1479_s29 = smov %s1149_s18 }
  0xe0   : > { %s1480_s30 = smov %s1045_s9  ;;  %24 = sbr.rel (!%p22_p3) target bundleno = 11 (0xb), region = 116 }
  0xe3   : > { %s1481_s9 = smov %s1476_s15 }
  0xe5   :  { %732 = vsyncpa [#allocation3], 1 }
  0xe6   :  { %734 = vsyncpa [#allocation3 + $0x1], 1 }
  0xe7   :  { %735 = vsyncpa [#allocation5], 1 }
  0xe8   :  { %737 = vsyncpa [#allocation5 + $0x1], 1 }

</bundles_post_ra>
